<compile_context>
chip_gen: v7x
topology: tpu7x:2x2x1
jax: 0.10.0
libtpu: 0.0.40
codegen_flags: <defaults>
</compile_context>

<pallas_src>
import functools
import math

import jax
import jax.numpy as jnp
from jax.experimental import pallas as pl
from jax.experimental.pallas import tpu as pltpu


def _chip_vmem_limit_bytes():
    """Chip-aware scoped-VMEM limit: ~3/4 of physical, capped at 96 MiB.
    -> 48 MiB on v7x (64 MiB physical), 96 MiB on v5e/v6e (128 MiB physical)."""
    try:
        cap = int(pltpu.get_tpu_info().vmem_capacity_bytes)
    except Exception:
        cap = 64 * 1024 * 1024          # conservative (v7x-sized) fallback
    return min(96 * 1024 * 1024, (cap * 3) // 4)


_VMEM_LIMIT = _chip_vmem_limit_bytes()


def _tile(dim, target, align=128):
    """Largest divisor of `dim` that is <= target and a multiple of `align`;
    falls back to the full dim (full-extent blocks are always legal).  Using
    the plain largest 128-multiple divisor (no 256 preference) picks
    384/768/1152 instead of 256 for BERT dims on every generation."""
    if dim <= target:
        return dim
    t = (target // align) * align
    while t >= align:
        if dim % t == 0:
            return t
        t -= align
    return dim


# ----------------------------- Pallas kernels ------------------------------

def _dense_kernel(x_ref, w_ref, b_ref, o_ref, acc_ref, *, activation):
    k = pl.program_id(2)

    @pl.when(k == 0)
    def _():
        acc_ref[...] = jnp.zeros_like(acc_ref)

    acc_ref[...] += jnp.dot(x_ref[...], w_ref[...],
                            preferred_element_type=jnp.float32)

    @pl.when(k == pl.num_programs(2) - 1)
    def _():
        y = acc_ref[...] + b_ref[...]            # bias hoisted out of the K loop
        if activation == "gelu":
            # TODO(synk): HF BERT uses exact erf-GELU; tanh approximation is the
            # Mosaic-safe lowering (difference is O(1e-3) at these magnitudes).
            y = jax.nn.gelu(y, approximate=True)
        o_ref[...] = y.astype(o_ref.dtype)


def dense(x, w, b, activation=None, out_dtype=jnp.bfloat16,
          tm=1024, tn=1536, tk=1536):
    """Tiled matmul: (M, K) @ (K, N) + b, bf16 operands / f32 accumulation.
    Defaults give tk = full K (768/1024) and tn = 768/1152/1536 for BERT
    shapes; footprint stays ~15-20 MiB, well under the scoped-VMEM limit."""
    M, K = x.shape
    N = w.shape[1]
    tm = _tile(M, tm, align=8)
    tn = _tile(N, tn)
    tk = _tile(K, tk)
    grid = (M // tm, N // tn, K // tk)
    return pl.pallas_call(
        functools.partial(_dense_kernel, activation=activation),
        out_shape=jax.ShapeDtypeStruct((M, N), out_dtype),
        grid=grid,
        in_specs=[
            pl.BlockSpec((tm, tk), lambda i, j, k: (i, k)),
            # TODO(synk): bump to pipeline_mode=pl.Buffered(3) only if profiling
            # shows the weight DMA exposed (default double-buffering is enough
            # with full-K tiles).
            pl.BlockSpec((tk, tn), lambda i, j, k: (k, j)),
            pl.BlockSpec((1, tn), lambda i, j, k: (0, j)),
        ],
        out_specs=pl.BlockSpec((tm, tn), lambda i, j, k: (i, j)),
        scratch_shapes=[pltpu.VMEM((tm, tn), jnp.float32)],
        compiler_params=pltpu.CompilerParams(
            dimension_semantics=("parallel", "parallel", "arbitrary"),
            vmem_limit_bytes=_VMEM_LIMIT),
    )(x, w, b.reshape(1, N))


def _dense_res_ln_kernel(x_ref, w_ref, b_ref, r_ref, g_ref, bt_ref,
                         o_ref, acc_ref, *, eps):
    k = pl.program_id(1)

    @pl.when(k == 0)
    def _():
        acc_ref[...] = jnp.zeros_like(acc_ref)

    acc_ref[...] += jnp.dot(x_ref[...], w_ref[...],
                            preferred_element_type=jnp.float32)

    @pl.when(k == pl.num_programs(1) - 1)
    def _():
        # bias + residual + LayerNorm fused on the accumulator tile (f32 math).
        h = acc_ref[...] + b_ref[...] + r_ref[...].astype(jnp.float32)
        mu = jnp.mean(h, axis=-1, keepdims=True)
        d = h - mu
        var = jnp.mean(d * d, axis=-1, keepdims=True)
        y = d * jax.lax.rsqrt(var + eps) * g_ref[...] + bt_ref[...]
        o_ref[...] = y.astype(o_ref.dtype)


def dense_residual_layernorm(x, w, b, residual, gamma, beta,
                             eps=1e-12, tm=1024, tk=1024):
    """out = LayerNorm(x @ w + b + residual); LN reduces over the full H axis,
    so the N dimension is kept whole (H is a 128-multiple at real BERT sizes).
    tm=1024 halves weight re-reads and grid-step overhead vs tm=512."""
    M, K = x.shape
    H = w.shape[1]
    tm = _tile(M, tm, align=8)
    tk = _tile(K, tk)
    grid = (M // tm, K // tk)
    return pl.pallas_call(
        functools.partial(_dense_res_ln_kernel, eps=eps),
        out_shape=jax.ShapeDtypeStruct((M, H), jnp.bfloat16),
        grid=grid,
        in_specs=[
            pl.BlockSpec((tm, tk), lambda i, k: (i, k)),
            pl.BlockSpec((tk, H), lambda i, k: (k, 0)),
            pl.BlockSpec((1, H), lambda i, k: (0, 0)),
            pl.BlockSpec((tm, H), lambda i, k: (i, 0)),
            pl.BlockSpec((1, H), lambda i, k: (0, 0)),
            pl.BlockSpec((1, H), lambda i, k: (0, 0)),
        ],
        out_specs=pl.BlockSpec((tm, H), lambda i, k: (i, 0)),
        scratch_shapes=[pltpu.VMEM((tm, H), jnp.float32)],
        compiler_params=pltpu.CompilerParams(
            dimension_semantics=("parallel", "arbitrary"),
            vmem_limit_bytes=_VMEM_LIMIT),
    )(x, w, b.reshape(1, H), residual, gamma.reshape(1, H), beta.reshape(1, H))


def _ln_kernel(x_ref, g_ref, b_ref, o_ref, *, eps):
    h = x_ref[...].astype(jnp.float32)
    mu = jnp.mean(h, axis=-1, keepdims=True)
    d = h - mu
    var = jnp.mean(d * d, axis=-1, keepdims=True)
    o_ref[...] = (d * jax.lax.rsqrt(var + eps) * g_ref[...]
                  + b_ref[...]).astype(o_ref.dtype)


def layernorm(x, gamma, beta, eps=1e-12, tm=1024):
    """Standalone LN (embeddings only); tiled over tokens."""
    M, H = x.shape
    tm = _tile(M, tm, align=8)
    return pl.pallas_call(
        functools.partial(_ln_kernel, eps=eps),
        out_shape=jax.ShapeDtypeStruct((M, H), jnp.bfloat16),
        grid=(M // tm,),
        in_specs=[pl.BlockSpec((tm, H), lambda i: (i, 0)),
                  pl.BlockSpec((1, H), lambda i: (0, 0)),
                  pl.BlockSpec((1, H), lambda i: (0, 0))],
        out_specs=pl.BlockSpec((tm, H), lambda i: (i, 0)),
        compiler_params=pltpu.CompilerParams(
            dimension_semantics=("parallel",),
            vmem_limit_bytes=_VMEM_LIMIT),
    )(x, gamma.reshape(1, H), beta.reshape(1, H))


def _flash_attn_kernel(q_ref, k_ref, v_ref, m_ref, o_ref,
                       m_sc, l_sc, acc_sc, *, grp, head_dim):
    """Flash-style online softmax over kv tiles.  One 128-lane head-group per
    grid step; Q is pre-scaled by 1/sqrt(head_dim) at parameter init."""
    ki = pl.program_id(3)

    @pl.when(ki == 0)
    def _():
        m_sc[...] = jnp.full_like(m_sc, -jnp.inf)
        l_sc[...] = jnp.zeros_like(l_sc)
        acc_sc[...] = jnp.zeros_like(acc_sc)

    q = q_ref[0]                      # (tq, grp*head_dim) bf16
    k = k_ref[0]                      # (tk, grp*head_dim) bf16
    v = v_ref[0]                      # (tk, grp*head_dim) bf16
    mask = m_ref[0]                   # (1, tk) f32 additive mask

    for h in range(grp):              # grp is small (1 or 2): bounded live set
        sl = slice(h * head_dim, (h + 1) * head_dim)
        s = jax.lax.dot_general(q[:, sl], k[:, sl], (((1,), (1,)), ((), ())),
                                preferred_element_type=jnp.float32)   # (tq, tk)
        s = s + mask
        m_prev = m_sc[h]                                              # (tq, 1)
        m_new = jnp.maximum(m_prev, jnp.max(s, axis=-1, keepdims=True))
        alpha = jnp.exp(m_prev - m_new)
        p = jnp.exp(s - m_new)
        l_sc[h] = alpha * l_sc[h] + jnp.sum(p, axis=-1, keepdims=True)
        acc_sc[:, sl] = alpha * acc_sc[:, sl] + jnp.dot(
            p.astype(jnp.bfloat16), v[:, sl],
            preferred_element_type=jnp.float32)
        m_sc[h] = m_new

    @pl.when(ki == pl.num_programs(3) - 1)
    def _():
        for h in range(grp):
            sl = slice(h * head_dim, (h + 1) * head_dim)
            acc_sc[:, sl] = acc_sc[:, sl] * pl.reciprocal(l_sc[h], approx=True)
        o_ref[0] = acc_sc[...].astype(o_ref.dtype)     # lane-dense 128-wide store


def _attn_kernel_small(qkv_ref, m_ref, o_ref, *, n_heads, head_dim):
    """Fallback (toy / irregular head sizes): full softmax per head, per batch."""
    H = n_heads * head_dim
    qkv = qkv_ref[0]                       # (S, 3H) bf16
    mask = m_ref[0]                        # (1, S) additive mask
    for h in range(n_heads):
        qh = qkv[:, h * head_dim:(h + 1) * head_dim]
        kh = qkv[:, H + h * head_dim:H + (h + 1) * head_dim]
        vh = qkv[:, 2 * H + h * head_dim:2 * H + (h + 1) * head_dim]
        s = jax.lax.dot_general(qh, kh, (((1,), (1,)), ((), ())),
                                preferred_element_type=jnp.float32) + mask
        s = s - jnp.max(s, axis=-1, keepdims=True)
        p = jnp.exp(s)
        p = p * pl.reciprocal(jnp.sum(p, axis=-1, keepdims=True), approx=True)
        ctx = jnp.dot(p.astype(jnp.bfloat16), vh,
                      preferred_element_type=jnp.float32)
        o_ref[0, :, h * head_dim:(h + 1) * head_dim] = ctx.astype(o_ref.dtype)


def attention(qkv, add_mask, n_heads, head_dim, tq=512, tk=512):
    """qkv: (B, S, 3H) bf16 from the fused QKV projection -> (B, S, H) bf16."""
    B, S, threeH = qkv.shape
    H = n_heads * head_dim

    # Head grouping so each block's last dim is a 128-lane multiple.
    if head_dim % 128 == 0:
        grp = 1
    elif 128 % head_dim == 0 and n_heads % (128 // head_dim) == 0:
        grp = 128 // head_dim
    else:
        grp = None

    if grp is None:
        # Toy / irregular head sizes: one batch per grid step, full softmax.
        return pl.pallas_call(
            functools.partial(_attn_kernel_small,
                              n_heads=n_heads, head_dim=head_dim),
            out_shape=jax.ShapeDtypeStruct((B, S, H), jnp.bfloat16),
            grid=(B,),
            in_specs=[pl.BlockSpec((1, S, threeH), lambda b: (b, 0, 0)),
                      pl.BlockSpec((1, 1, S), lambda b: (b, 0, 0))],
            out_specs=pl.BlockSpec((1, S, H), lambda b: (b, 0, 0)),
            compiler_params=pltpu.CompilerParams(
                dimension_semantics=("parallel",),
                vmem_limit_bytes=_VMEM_LIMIT),
        )(qkv, add_mask)

    d_grp = grp * head_dim                 # multiple of 128
    n_grp = H // d_grp
    tq = _tile(S, tq, align=8)
    tk = _tile(S, tk, align=128)
    grid = (B, n_grp, S // tq, S // tk)

    return pl.pallas_call(
        functools.partial(_flash_attn_kernel, grp=grp, head_dim=head_dim),
        out_shape=jax.ShapeDtypeStruct((B, S, H), jnp.bfloat16),
        grid=grid,
        in_specs=[
            # Q / K / V regions of the fused (B, S, 3H) projection, addressed
            # directly by block index (no HBM split/transpose).
            pl.BlockSpec((1, tq, d_grp), lambda b, g, qi, ki: (b, qi, g)),
            pl.BlockSpec((1, tk, d_grp), lambda b, g, qi, ki: (b, ki, n_grp + g)),
            pl.BlockSpec((1, tk, d_grp), lambda b, g, qi, ki: (b, ki, 2 * n_grp + g)),
            pl.BlockSpec((1, 1, tk), lambda b, g, qi, ki: (b, 0, ki)),
        ],
        out_specs=pl.BlockSpec((1, tq, d_grp), lambda b, g, qi, ki: (b, qi, g)),
        scratch_shapes=[pltpu.VMEM((grp, tq, 1), jnp.float32),   # running max
                        pltpu.VMEM((grp, tq, 1), jnp.float32),   # running sum
                        pltpu.VMEM((tq, d_grp), jnp.float32)],   # ctx accumulator
        compiler_params=pltpu.CompilerParams(
            dimension_semantics=("parallel", "parallel", "parallel", "arbitrary"),
            vmem_limit_bytes=_VMEM_LIMIT),
    )(qkv, qkv, qkv, add_mask)


def _cls_ce_kernel(x_ref, w_ref, b_ref, lbl_ref, loss_ref, num_ref, den_ref):
    i = pl.program_id(0)

    @pl.when(i == 0)
    def _():
        num_ref[...] = jnp.zeros_like(num_ref)
        den_ref[...] = jnp.zeros_like(den_ref)

    # Classifier matmul fused in: the (tm, 3) logits stay in VMEM, never HBM.
    logits = jnp.dot(x_ref[...], w_ref[...],
                     preferred_element_type=jnp.float32) + b_ref[...]
    labels = lbl_ref[...]                                   # (tm, 1) int32
    m = jnp.max(logits, axis=-1, keepdims=True)
    lse = jnp.log(jnp.sum(jnp.exp(logits - m), axis=-1, keepdims=True)) + m
    cls_idx = jax.lax.broadcasted_iota(jnp.int32, logits.shape, 1)
    true_logit = jnp.sum(jnp.where(cls_idx == labels, logits, 0.0),
                         axis=-1, keepdims=True)
    valid = (labels != -100).astype(jnp.float32)            # ignore_index=-100
    # TODO(synk): labels/num/den could live in SMEM (scalar path) per review;
    # kept in VMEM for lowering robustness — this kernel is off the hot loop.
    num_ref[...] += jnp.sum((lse - true_logit) * valid, keepdims=True)
    den_ref[...] += jnp.sum(valid, keepdims=True)

    @pl.when(i == pl.num_programs(0) - 1)
    def _():
        # guard the all-ignored 0/0 case (torch would return NaN here);
        # exact divide for the final mean (no approx reciprocal bias).
        den = jnp.maximum(den_ref[...], 1.0)
        loss_ref[...] = num_ref[...] / den


def classifier_cross_entropy(x, w, b, labels, tm=1024):
    M, H = x.shape
    C = w.shape[1]
    tm = _tile(M, tm, align=8)
    out = pl.pallas_call(
        _cls_ce_kernel,
        out_shape=jax.ShapeDtypeStruct((1, 1), jnp.float32),
        grid=(M // tm,),
        in_specs=[pl.BlockSpec((tm, H), lambda i: (i, 0)),
                  pl.BlockSpec((H, C), lambda i: (0, 0)),
                  pl.BlockSpec((1, C), lambda i: (0, 0)),
                  pl.BlockSpec((tm, 1), lambda i: (i, 0))],
        out_specs=pl.BlockSpec((1, 1), lambda i: (0, 0)),
        scratch_shapes=[pltpu.VMEM((1, 1), jnp.float32),
                        pltpu.VMEM((1, 1), jnp.float32)],
        compiler_params=pltpu.CompilerParams(
            dimension_semantics=("arbitrary",),
            vmem_limit_bytes=_VMEM_LIMIT),
    )(x, w, b.reshape(1, C), labels.reshape(M, 1).astype(jnp.int32))
    return out[0, 0]


# ------------------------- parameters (synthetic) ---------------------------

def init_params(key, cfg):
    H, I, V, P = cfg["hidden"], cfg["intermediate"], cfg["vocab"], cfg["max_pos"]
    keys = iter(jax.random.split(key, 4 + 6 * cfg["layers"]))

    def wf(shape):                       # f32 master weight
        return 0.02 * jax.random.normal(next(keys), shape, jnp.float32)

    zeros = lambda s: jnp.zeros(s, jnp.float32)
    ones = lambda s: jnp.ones(s, jnp.float32)
    scale = 1.0 / math.sqrt(cfg["head_dim"])

    params = {
        "word_emb": wf((V, H)),           # gathered in plain JAX, kept f32
        "pos_emb": wf((P, H)),
        "type_emb": wf((2, H)),
        "emb_ln_g": ones((H,)), "emb_ln_b": zeros((H,)),
        "cls_w": wf((H, 3)).astype(jnp.bfloat16), "cls_b": zeros((3,)),
        "layers": [],
    }
    for _ in range(cfg["layers"]):
        qw, kw, vw = wf((H, H)), wf((H, H)), wf((H, H))
        params["layers"].append({
            # Fused QKV projection; the softmax 1/sqrt(d) scale is folded into
            # the Q columns (and Q bias) in f32 before the bf16 cast, so the
            # attention kernels apply no per-score scaling.
            "qkv_w": jnp.concatenate([qw * scale, kw, vw],
                                     axis=1).astype(jnp.bfloat16),    # (H, 3H)
            "qkv_b": jnp.concatenate([zeros((H,)) * scale,
                                      zeros((H,)), zeros((H,))], axis=0),
            "ao_w": wf((H, H)).astype(jnp.bfloat16), "ao_b": zeros((H,)),
            "ao_ln_g": ones((H,)), "ao_ln_b": zeros((H,)),
            "i_w": wf((H, I)).astype(jnp.bfloat16), "i_b": zeros((I,)),
            "o_w": wf((I, H)).astype(jnp.bfloat16), "o_b": zeros((H,)),
            "o_ln_g": ones((H,)), "o_ln_b": zeros((H,)),
        })
    return params


# ------------------------------- forward ------------------------------------

def bert_layer(x, add_mask, p, cfg, B, S):
    H, nH, dh = cfg["hidden"], cfg["heads"], cfg["head_dim"]

    qkv = dense(x, p["qkv_w"], p["qkv_b"])                       # (B*S, 3H)
    ctx = attention(qkv.reshape(B, S, 3 * H), add_mask,
                    n_heads=nH, head_dim=dh)                     # (B, S, H)
    x = dense_residual_layernorm(ctx.reshape(B * S, H),
                                 p["ao_w"], p["ao_b"], x,
                                 p["ao_ln_g"], p["ao_ln_b"])
    inter = dense(x, p["i_w"], p["i_b"], activation="gelu")      # (B*S, I)
    x = dense_residual_layernorm(inter, p["o_w"], p["o_b"], x,
                                 p["o_ln_g"], p["o_ln_b"])
    return x


def abte_bert_forward(params, cfg, ids, tags, masks):
    """Mirrors ABTEBert.forward: returns scalar CE loss if tags given,
    else per-token logits (B, S, 3).
    # TODO(synk): dropout is identity (eval semantics); token_type_ids fixed to 0."""
    B, S = ids.shape
    H = cfg["hidden"]

    # Embedding gathers stay in plain JAX (no Pallas gather needed here).
    emb = (params["word_emb"][ids]
           + params["pos_emb"][:S][None, :, :]
           + params["type_emb"][0][None, None, :])
    x = layernorm(emb.reshape(B * S, H).astype(jnp.float32),
                  params["emb_ln_g"], params["emb_ln_b"])        # bf16 (B*S, H)

    # HF-style additive attention mask: (1 - mask) * finfo(f32).min
    add_mask = ((1.0 - masks.astype(jnp.float32))
                * jnp.finfo(jnp.float32).min).reshape(B, 1, S)

    for p in params["layers"]:
        x = bert_layer(x, add_mask, p, cfg, B, S)

    if tags is None:
        logits = dense(x, params["cls_w"], params["cls_b"],
                       out_dtype=jnp.float32)                    # (B*S, 3)
        return logits.reshape(B, S, 3)
    return classifier_cross_entropy(x, params["cls_w"], params["cls_b"],
                                    tags.reshape(-1))


# --------------------------------- main --------------------------------------

if __name__ == "__main__":
    # Small BERT-like config; head_dim=64 exercises the 128-lane head-pair
    # flash-attention path (the same one real BERT shapes use).
    cfg = dict(vocab=64, hidden=128, heads=2, head_dim=64,
               intermediate=256, layers=2, max_pos=16)
    B, S = 2, 8

    key = jax.random.PRNGKey(0)
    pkey, ikey, tkey = jax.random.split(key, 3)

    params = init_params(pkey, cfg)
    ids = jax.random.randint(ikey, (B, S), 0, cfg["vocab"], dtype=jnp.int32)
    tags = jax.random.randint(tkey, (B, S), 0, 3, dtype=jnp.int32)
    masks = jnp.ones((B, S), jnp.int32).at[1, 6:].set(0)

    loss = abte_bert_forward(params, cfg, ids, tags, masks)      # loss path
    logits = abte_bert_forward(params, cfg, ids, None, masks)    # inference path
    jax.block_until_ready((loss, logits))

    assert loss.shape == () and logits.shape == (B, S, 3)
    assert bool(jnp.isfinite(loss))
    print("KERNEL_OK")
</pallas_src>

<mosaic_0001>
module attributes {stable_mosaic.version = 11 : i64} {
  func.func @_ln_kernel(%arg0: i32, %arg1: memref<16x128xf32, #tpu.memory_space<vmem>>, %arg2: memref<1x128xf32, #tpu.memory_space<vmem>>, %arg3: memref<1x128xf32, #tpu.memory_space<vmem>>, %arg4: memref<16x128xbf16, #tpu.memory_space<vmem>>) attributes {dimension_semantics = [#tpu.dimension_semantics<parallel>], iteration_bounds = array<i64: 1>, scalar_prefetch = 0 : i64, scratch_operands = 0 : i64, tpu.core_type = #tpu.core_type<tc>, window_params = [{transform_indices = @transform_0, window_bounds = array<i64: 16, 128>}, {pipeline_mode = #tpu.pipeline_mode<synchronous>, transform_indices = @transform_1, window_bounds = array<i64: 1, 128>}, {pipeline_mode = #tpu.pipeline_mode<synchronous>, transform_indices = @transform_2, window_bounds = array<i64: 1, 128>}, {transform_indices = @transform_3, window_bounds = array<i64: 16, 128>}]} {
    %c0 = arith.constant 0 : index
    %c0_0 = arith.constant 0 : index
    %0 = vector.load %arg1[%c0, %c0_0] : memref<16x128xf32, #tpu.memory_space<vmem>>, vector<16x128xf32>
    %cst = arith.constant dense<0.000000e+00> : vector<16xf32>
    %1 = vector.multi_reduction <add>, %0, %cst [1] : vector<16x128xf32> to vector<16xf32>
    %2 = vector.shape_cast %1 : vector<16xf32> to vector<16x1xf32>
    %cst_1 = arith.constant 1.280000e+02 : f32
    %3 = vector.broadcast %cst_1 : f32 to vector<16x1xf32>
    %4 = arith.divf %2, %3 : vector<16x1xf32>
    %5 = vector.broadcast %4 : vector<16x1xf32> to vector<16x128xf32>
    %6 = arith.subf %0, %5 : vector<16x128xf32>
    %7 = arith.mulf %6, %6 : vector<16x128xf32>
    %cst_2 = arith.constant dense<0.000000e+00> : vector<16xf32>
    %8 = vector.multi_reduction <add>, %7, %cst_2 [1] : vector<16x128xf32> to vector<16xf32>
    %9 = vector.shape_cast %8 : vector<16xf32> to vector<16x1xf32>
    %cst_3 = arith.constant 1.280000e+02 : f32
    %10 = vector.broadcast %cst_3 : f32 to vector<16x1xf32>
    %11 = arith.divf %9, %10 : vector<16x1xf32>
    %cst_4 = arith.constant 9.99999996E-13 : f32
    %12 = vector.broadcast %cst_4 : f32 to vector<16x1xf32>
    %13 = arith.addf %11, %12 : vector<16x1xf32>
    %14 = math.rsqrt %13 : vector<16x1xf32>
    %15 = vector.broadcast %14 : vector<16x1xf32> to vector<16x128xf32>
    %16 = arith.mulf %6, %15 : vector<16x128xf32>
    %c0_5 = arith.constant 0 : index
    %c0_6 = arith.constant 0 : index
    %17 = vector.load %arg2[%c0_5, %c0_6] : memref<1x128xf32, #tpu.memory_space<vmem>>, vector<1x128xf32>
    %18 = vector.broadcast %17 : vector<1x128xf32> to vector<16x128xf32>
    %19 = arith.mulf %16, %18 : vector<16x128xf32>
    %c0_7 = arith.constant 0 : index
    %c0_8 = arith.constant 0 : index
    %20 = vector.load %arg3[%c0_7, %c0_8] : memref<1x128xf32, #tpu.memory_space<vmem>>, vector<1x128xf32>
    %21 = vector.broadcast %20 : vector<1x128xf32> to vector<16x128xf32>
    %22 = arith.addf %19, %21 : vector<16x128xf32>
    %23 = arith.truncf %22 : vector<16x128xf32> to vector<16x128xbf16>
    %c0_9 = arith.constant 0 : index
    %c0_10 = arith.constant 0 : index
    %24 = vector.load %arg4[%c0_9, %c0_10] : memref<16x128xbf16, #tpu.memory_space<vmem>>, vector<16x128xbf16>
    tpu.vector_store %arg4[%c0_9, %c0_10], %23 {strides = array<i32>} : memref<16x128xbf16, #tpu.memory_space<vmem>>, vector<16x128xbf16>,
    return
  }
  func.func @transform_0(%arg0: i32) -> (i32, i32) {
    %c0_i32 = arith.constant 0 : i32
    %c0_i32_0 = arith.constant 0 : i32
    return %arg0, %c0_i32 : i32, i32
  }
  func.func @transform_1(%arg0: i32) -> (i32, i32) {
    %c0_i32 = arith.constant 0 : i32
    %c0_i32_0 = arith.constant 0 : i32
    %c0_i32_1 = arith.constant 0 : i32
    return %c0_i32, %c0_i32_0 : i32, i32
  }
  func.func @transform_2(%arg0: i32) -> (i32, i32) {
    %c0_i32 = arith.constant 0 : i32
    %c0_i32_0 = arith.constant 0 : i32
    %c0_i32_1 = arith.constant 0 : i32
    return %c0_i32, %c0_i32_0 : i32, i32
  }
  func.func @transform_3(%arg0: i32) -> (i32, i32) {
    %c0_i32 = arith.constant 0 : i32
    %c0_i32_0 = arith.constant 0 : i32
    return %arg0, %c0_i32 : i32, i32
  }
}

</mosaic_0001>

<bundles_post_ra>
// kernel: tpu_custom_call.1
= control target key start
LH: loop header
LB: loop body
LE: loop exit
PB: predicated region body
PF: predicated region fallthrough
CT: control target
= control target key end

     0   :  { %8 = vsyncpa [#allocation3], 0  ;;  %s224_s0 = inlined_call_operand.hbm [shape: f32[16,128], index: 0, kind: input, shape index: {}]   ;;  %s225_s1 = inlined_call_operand.vmem [shape: f32[1,128], index: 1, kind: input, shape index: {}]   ;;  %s226_s2 = inlined_call_operand.vmem [shape: f32[1,128], index: 2, kind: input, shape index: {}]   ;;  %s227_s3 = inlined_call_operand.hbm [shape: bf16[16,128], index: 3, kind: output, shape index: {}]  }
   0x1   :  { %9 = vsyncpa [#allocation4], 0  ;;  %s168_s12 = smov [#allocation2]   ;;  %s120_s16 = scalar_lea.hbm %s224_s0, 256 }
   0x2   :  { %s15_s13 = sshll.u32 %s168_s12, 4  ;;  %p121_p0 = scmp.ne.s32.totalorder %s224_s0, %s120_s16  ;;  %s16_s13 = int_to_ptr.vmem [resolvable:$true] %s15_s13 }
   0x3   :  { %p124_p1 = scmp.lt.u32.totalorder %s120_s16, %s224_s0 }
   0x5   :  { %p126_p2 = pnand %p124_p1, %p121_p0 }
   0x7   :  { %129 = shalt.err (!%p126_p2)
}
   0x8   :  { %s130_s21 = scalar_lea.vmem %s16_s13, 256  ;;  %p135_p4 = scmp.lt.s32.totalorder %s16_s13, %s16_s13 }
   0x9   :  { %p131_p3 = scmp.ne.s32.totalorder %s16_s13, %s130_s21  ;;  %p136_p5 = scmp.lt.s32.totalorder %s130_s21, %s130_s21 }
   0xb   :  { %p137_p6 = por %p136_p5, %p135_p4 }
   0xd   :  { %p138_p7 = pnand %p137_p6, %p131_p3 }
   0xf   :  { %141 = shalt.err (!%p138_p7)
}
  0x10   :  { %s169_s22 = smov 128   ;;  %s170_s23 = smov 8  }
  0x11   :  { %21 = dma.hbm_to_vmem [thread:$0]  %s224_s0, 256, %s16_s13, [#allocation3], %s169_s22, %s169_s22, %s170_s23  }
  0x12   :  { %164 = dma.done.wait [#allocation3], 256  }
  0x13   :  { %165 = vsyncadd [#allocation3], 4294967040  ;;  %v29_v0 = vld [vmem:[#allocation2] sm:$0xff]  ;;  %v30_v1 = vld [vmem:[#allocation2 + $0x8] sm:$0xff]  ;;  %s171_s29 = smov [#allocation5]  }
  0x14   :  { %31 = vadd.xlane.f32.xlu0 %v29_v0  ;;  %v99_v18 = vld [vmem:[%s225_s1] ss:$0 sm:$0xff]  ;;  %s87_s30 = sshll.u32 %s171_s29, 4  ;;  %s88_s30 = int_to_ptr.vmem [resolvable:$true] %s87_s30 }
  0x15   :  { %v100_v22 = vld [vmem:[%s226_s2] ss:$0 sm:$0xff]  ;;  %s142_s4 = scalar_lea.vmem %s88_s30, 128  ;;  %p147_p9 = scmp.lt.s32.totalorder %s88_s30, %s88_s30 }
  0x16   :  { %p143_p8 = scmp.ne.s32.totalorder %s88_s30, %s142_s4  ;;  %p148_p10 = scmp.lt.s32.totalorder %s142_s4, %s142_s4 }
  0x18   :  { %33 = vadd.xlane.f32.xlu0 %v30_v1  ;;  %p149_p11 = por %p148_p10, %p147_p9 }
  0x1a   :  { %p150_p12 = pnand %p149_p11, %p143_p8 }
  0xa1   :  { %v32_v2 = vpop.xlane.xlu0 %31 }
  0xa2   :  { %v36_v3 = vmul.f32 0.0078125, %v32_v2 }
  0xa4   :  { %v38_v4 = vsub.f32 %v29_v0, %v36_v3 }
  0xa5   :  { %v34_v5 = vpop.xlane.xlu0 %33 }
  0xa6   :  { %v37_v6 = vmul.f32 0.0078125, %v34_v5  ;;  %v40_v7 = vmul.f32 %v38_v4, %v38_v4 }
  0xa8   :  { %v39_v8 = vsub.f32 %v30_v1, %v37_v6  ;;  %42 = vadd.xlane.f32.xlu1 %v40_v7 }
  0xaa   :  { %v41_v9 = vmul.f32 %v39_v8, %v39_v8 }
  0xac   :  { %44 = vadd.xlane.f32.xlu1 %v41_v9 }
 0x135   :  { %v43_v10 = vpop.xlane.xlu1 %42 }
 0x136   :  { %v46_v11 = vmul.f32 0.0078125, %v43_v10 }
 0x138   :  { %v48_v12 = vadd.f32 1e-12, %v46_v11 }
 0x139   :  { %v45_v13 = vpop.xlane.xlu1 %44 }
 0x13a   :  { %116 = vrsqrt.f32 %v48_v12  ;;  %v47_v14 = vmul.f32 0.0078125, %v45_v13 }
 0x13c   :  { %v49_v15 = vadd.f32 1e-12, %v47_v14 }
 0x13e   :  { %118 = vrsqrt.f32 %v49_v15 }
 0x144   :  { %v117_v16 = vpop.eup %116 }
 0x145   :  { %v52_v17 = vmul.f32 %v117_v16, %v38_v4 }
 0x147   :  { %v61_v21 = vmul.f32 %v99_v18, %v52_v17 }
 0x148   :  { %v119_v19 = vpop.eup %118 }
 0x149   :  { %v53_v20 = vmul.f32 %v119_v19, %v39_v8  ;;  %v70_v24 = vadd.f32 %v100_v22, %v61_v21 }
 0x14b   :  { %v62_v23 = vmul.f32 %v99_v18, %v53_v20 }
 0x14d   :  { %v71_v25 = vadd.f32 %v100_v22, %v62_v23 }
 0x14f   :  { %v108_v26 = vpack.c.bf16 %v71_v25, %v70_v24 }
 0x151   :  { %109 = vst [vmem:[#allocation5] sm:$0xff] %v108_v26  }
 0x152   :  { %153 = shalt.err (!%p150_p12)
}
 0x153   :  { %s154_s6 = scalar_lea.hbm %s227_s3, 128 }
 0x154   :  { %p155_p13 = scmp.ne.s32.totalorder %s227_s3, %s154_s6  ;;  %p158_p0 = scmp.lt.u32.totalorder %s154_s6, %s227_s3 }
 0x156   :  { %p160_p1 = pnand %p158_p0, %p155_p13 }
 0x158   :  { %163 = shalt.err (!%p160_p1)
}
 0x159   :  { %s172_s10 = smov 64   ;;  %s173_s11 = smov 4  }
 0x15a   :  { %93 = dma.vmem_to_hbm [thread:$0]  %s88_s30, 128, %s227_s3, [#allocation4], %s172_s10, %s172_s10, %s173_s11  }
 0x15b   :  { %166 = dma.done.wait [#allocation4], 128  }
 0x15c   :  { %167 = vsyncadd [#allocation4], 4294967168 }
 0x15d   :  { %97 = vsyncpa [#allocation3], 1 }
 0x15e   :  { %98 = vsyncpa [#allocation4], 1 }

</bundles_post_ra>
